<compile_context>
chip_gen: v5e
topology: v5e:2x2
jax: 0.10.0
libtpu: 0.0.40
codegen_flags: <defaults>
</compile_context>

<pallas_src>
import functools

import jax
import jax.numpy as jnp
from jax.experimental import pallas as pl
from jax.experimental.pallas import tpu as pltpu


def _round_up(n, m):
    return pl.cdiv(n, m) * m


def fused_mlp_kernel(x_ref, w_ref, b_ref, o_ref):
    # One affine map per batch tile: single MXU matmul + VPU bias add.
    y = jnp.dot(x_ref[...], w_ref[...], preferred_element_type=jnp.float32)
    o_ref[...] = (y + b_ref[...]).astype(o_ref.dtype)


def prepare_params(params):
    """One-time algebraic fusion of the 3 bias-only linears into one affine map.

    ((x@w1+b1)@w2+b2)@w3+b3 == x @ (w1@w2@w3) + ((b1@w2+b2)@w3 + b3)
    """
    w_fused = params["w1"] @ params["w2"] @ params["w3"]
    b_fused = (params["b1"] @ params["w2"] + params["b2"]) @ params["w3"] + params["b3"]
    return w_fused, b_fused


@functools.partial(jax.jit, static_argnames=("block_batch",))
def mlp_forward(x, w_fused, b_fused, *, block_batch=512):
    """x: [B, input_size]; w_fused: [input_size, output_size]; b_fused: [1, output_size]."""
    B, in_dim = x.shape
    out_dim = w_fused.shape[1]

    # Core-aware, sublane-aligned batch tile: grid >= 2 when possible (v7x has
    # 2 TCs), tiles capped at block_batch (>=512 rows reaches ~85% HBM roofline).
    tb = _round_up(pl.cdiv(B, 2), 8)
    tb = min(tb, _round_up(block_batch, 8))
    b_pad = _round_up(B, tb)

    xp = x if b_pad == B else jnp.zeros((b_pad, in_dim), x.dtype).at[:B].set(x)

    out = pl.pallas_call(
        fused_mlp_kernel,
        out_shape=jax.ShapeDtypeStruct((b_pad, out_dim), x.dtype),
        grid=(b_pad // tb,),
        in_specs=[
            # Batch tile of x; feature dim is the full array dim (no K padding).
            pl.BlockSpec((tb, in_dim), lambda i: (i, 0)),
            # Fused weight / bias: full-dim blocks, constant index_map -> VMEM-resident.
            pl.BlockSpec((in_dim, out_dim), lambda i: (0, 0)),
            pl.BlockSpec((1, out_dim), lambda i: (0, 0)),
        ],
        # Output written unpadded (full out_dim block); avoids padded writeback + slice.
        out_specs=pl.BlockSpec((tb, out_dim), lambda i: (i, 0)),
        compiler_params=pltpu.CompilerParams(
            dimension_semantics=("parallel",)),  # megacore sharding on v7x
    )(xp, w_fused, b_fused)

    return out if b_pad == B else out[:B]


def init_params(key, input_size, output_size, hidden_dim=5):
    """Mimic PyTorch nn.Linear default init: U(-1/sqrt(fan_in), +1/sqrt(fan_in))."""
    ks = jax.random.split(key, 6)

    def linear(kw, kb, fan_in, fan_out):
        bound = 1.0 / jnp.sqrt(fan_in)
        w = jax.random.uniform(kw, (fan_in, fan_out), jnp.float32, -bound, bound)
        b = jax.random.uniform(kb, (1, fan_out), jnp.float32, -bound, bound)
        return w, b

    w1, b1 = linear(ks[0], ks[1], input_size, hidden_dim)
    w2, b2 = linear(ks[2], ks[3], hidden_dim, hidden_dim)
    w3, b3 = linear(ks[4], ks[5], hidden_dim, output_size)
    return dict(w1=w1, b1=b1, w2=w2, b2=b2, w3=w3, b3=b3)


def mlp_reference(x, p):
    # Unfused 3-layer reference (matches the PyTorch module layer-by-layer).
    h = x @ p["w1"] + p["b1"]
    h = h @ p["w2"] + p["b2"]
    return h @ p["w3"] + p["b3"]


if __name__ == "__main__":
    key = jax.random.PRNGKey(0)
    k_x, k_p = jax.random.split(key)

    batch, input_size, output_size = 256, 16, 3
    x = jax.random.normal(k_x, (batch, input_size), jnp.float32)
    params = init_params(k_p, input_size, output_size)

    # One-time fusion of the constant weights/biases (hoisted out of the per-call path).
    w_fused, b_fused = prepare_params(params)
    w_fused = jax.block_until_ready(w_fused)

    out = mlp_forward(x, w_fused, b_fused)
    out = jax.block_until_ready(out)

    ref = mlp_reference(x, params)
    assert out.shape == (batch, output_size)
    assert jnp.allclose(out, ref, atol=2e-5, rtol=1e-5), float(jnp.max(jnp.abs(out - ref)))

    print("KERNEL_OK")
</pallas_src>

<mosaic_0001>
module attributes {stable_mosaic.version = 11 : i64} {
  func.func @fused_mlp_kernel(%arg0: i32, %arg1: memref<128x16xf32, #tpu.memory_space<vmem>>, %arg2: memref<16x3xf32, #tpu.memory_space<vmem>>, %arg3: memref<1x3xf32, #tpu.memory_space<vmem>>, %arg4: memref<128x3xf32, #tpu.memory_space<vmem>>) attributes {dimension_semantics = [#tpu.dimension_semantics<parallel>], iteration_bounds = array<i64: 2>, scalar_prefetch = 0 : i64, scratch_operands = 0 : i64, tpu.core_type = #tpu.core_type<tc>, window_params = [{transform_indices = @transform_0, window_bounds = array<i64: 128, 16>}, {pipeline_mode = #tpu.pipeline_mode<synchronous>, transform_indices = @transform_1, window_bounds = array<i64: 16, 3>}, {pipeline_mode = #tpu.pipeline_mode<synchronous>, transform_indices = @transform_2, window_bounds = array<i64: 1, 3>}, {transform_indices = @transform_3, window_bounds = array<i64: 128, 3>}]} {
    %c0 = arith.constant 0 : index
    %c0_0 = arith.constant 0 : index
    %0 = vector.load %arg1[%c0, %c0_0] : memref<128x16xf32, #tpu.memory_space<vmem>>, vector<128x16xf32>
    %c0_1 = arith.constant 0 : index
    %c0_2 = arith.constant 0 : index
    %1 = vector.load %arg2[%c0_1, %c0_2] : memref<16x3xf32, #tpu.memory_space<vmem>>, vector<16x3xf32>
    %cst = arith.constant dense<0.000000e+00> : vector<128x3xf32>
    %2 = tpu.matmul %0, %1, %cst {dimension_numbers = #tpu.dot_dimension_numbers<[1], [0], [0], [1], [0, 0, 1, 1], [], []>} : vector<128x16xf32>, vector<16x3xf32>, vector<128x3xf32> -> vector<128x3xf32>
    %c0_3 = arith.constant 0 : index
    %c0_4 = arith.constant 0 : index
    %3 = vector.load %arg3[%c0_3, %c0_4] : memref<1x3xf32, #tpu.memory_space<vmem>>, vector<1x3xf32>
    %4 = vector.broadcast %3 : vector<1x3xf32> to vector<128x3xf32>
    %5 = arith.addf %2, %4 : vector<128x3xf32>
    %c0_5 = arith.constant 0 : index
    %c0_6 = arith.constant 0 : index
    %6 = vector.load %arg4[%c0_5, %c0_6] : memref<128x3xf32, #tpu.memory_space<vmem>>, vector<128x3xf32>
    tpu.vector_store %arg4[%c0_5, %c0_6], %5 {strides = array<i32>} : memref<128x3xf32, #tpu.memory_space<vmem>>, vector<128x3xf32>,
    return
  }
  func.func @transform_0(%arg0: i32) -> (i32, i32) {
    %c0_i32 = arith.constant 0 : i32
    %c0_i32_0 = arith.constant 0 : i32
    return %arg0, %c0_i32 : i32, i32
  }
  func.func @transform_1(%arg0: i32) -> (i32, i32) {
    %c0_i32 = arith.constant 0 : i32
    %c0_i32_0 = arith.constant 0 : i32
    %c0_i32_1 = arith.constant 0 : i32
    return %c0_i32, %c0_i32_0 : i32, i32
  }
  func.func @transform_2(%arg0: i32) -> (i32, i32) {
    %c0_i32 = arith.constant 0 : i32
    %c0_i32_0 = arith.constant 0 : i32
    %c0_i32_1 = arith.constant 0 : i32
    return %c0_i32, %c0_i32_0 : i32, i32
  }
  func.func @transform_3(%arg0: i32) -> (i32, i32) {
    %c0_i32 = arith.constant 0 : i32
    %c0_i32_0 = arith.constant 0 : i32
    return %arg0, %c0_i32 : i32, i32
  }
}

</mosaic_0001>

<bundles_post_ra>
// kernel: mlp_forward.1
= control target key start
LH: loop header
LB: loop body
LE: loop exit
PB: predicated region body
PF: predicated region fallthrough
CT: control target
= control target key end

     0   :  { %s453_s12 = smov 0   ;;  %s536_s0 = inlined_call_operand.vmem [shape: f32[256,16], index: 0, kind: input, shape index: {}]   ;;  %s537_s1 = inlined_call_operand.vmem [shape: f32[16,3], index: 1, kind: input, shape index: {}]   ;;  %s538_s2 = inlined_call_operand.vmem [shape: f32[1,3], index: 2, kind: input, shape index: {}]   ;;  %s539_s3 = inlined_call_operand.vmem [shape: f32[256,3], index: 3, kind: output, shape index: {}]  }
   0x1 LB: > { %s383_s13 = sadd.s32 4294967295, %s431_s12   ;;  %p387_p0 = scmp.ge.s32.totalorder %s431_s12, 1  ;;  %s431_s12 = sphi %s453_s12, %s13_s12  }
   0x2   : > { %p138_p1 = scmp.lt.s32.totalorder %s431_s12, 3 }
   0x4   : > { %p139_p2 = pnand %p387_p0, %p138_p1 }
   0x5   : > { %s388_s18 = sshll.u32 (!%p139_p2), %s383_s13, 4 }
   0x6   : > { %142 = sbr.rel (%p139_p2) target bundleno = 176 (0xb0), region = 32  ;;  %p163_p3 = scmp.lt.s32.totalorder (!%p139_p2), %s388_s18, 31 }
   0xb   : > { %v191_v0 = vld [vmem:[%s537_s1 + $0x8] sm:$0xff]  ;;  %v190_v1 = vld [vmem:[%s537_s1] sm:$0xff]  ;;  %s541_s18 = smov (!%p163_p3, %s388_s18), 31  ;;  %vm196_vm0 = vcmask 130048   ;;  %vm310_vm1 = vcmask 23552  }
   0xc   : > { %411 = vmatpush.msra.mxu2 %v191_v0  ;;  %412 = vmatpush.msra.mxu3 %v191_v0  ;;  %s389_s19 = sshll.u32 %s541_s18, 3  ;;  %v424_v18 = vld [vmem:[%s538_s2] ss:$0 sm:$0xff] }
   0xd   : > { %259 = vmatpush.msra.mxu0 %v191_v0  ;;  %410 = vmatpush.msra.mxu1 %v191_v0  ;;  %s166_s22 = scalar_lea.vmem %s536_s0, %s389_s19  ;;  %s499_s27 = scalar_lea.vmem %s539_s3, %s389_s19 }
   0xe   : > { %414 = vmatpush.msra.mxu2 %v190_v1  ;;  %415 = vmatpush.msra.mxu3 %v190_v1  ;;  %v182_v2 = vld [vmem:[%s166_s22 + $0x40] sm:$0xff]  ;;  %v183_v6 = vld [vmem:[%s166_s22 + $0x48] sm:$0xff]  ;;  %v184_v10 = vld [vmem:[%s166_s22 + $0x50] sm:$0xff] }
   0xf   : > { %260 = vmatpush.msra.mxu0 %v190_v1  ;;  %413 = vmatpush.msra.mxu1 %v190_v1  ;;  %v186_v3 = vld [vmem:[%s166_s22 + $0x60] sm:$0xff]  ;;  %v187_v7 = vld [vmem:[%s166_s22 + $0x68] sm:$0xff]  ;;  %v188_v11 = vld [vmem:[%s166_s22 + $0x70] sm:$0xff] }
  0x10   : > { %v174_v4 = vld [vmem:[%s166_s22] sm:$0xff]  ;;  %400 = vmatmul.msk.f32.vlgmr.msra.gmra.mxu2 %vm196_vm0, %v182_v2  ;;  %404 = vmatmul.msk.f32.vlgmr.msra.gmra.mxu3 %vm196_vm0, %v186_v3  ;;  %v175_v8 = vld [vmem:[%s166_s22 + $0x8] sm:$0xff]  ;;  %v176_v12 = vld [vmem:[%s166_s22 + $0x10] sm:$0xff] }
  0x11   : > { %v178_v5 = vld [vmem:[%s166_s22 + $0x20] sm:$0xff]  ;;  %392 = vmatmul.msk.f32.vlgmr.msra.gmra.mxu0 %vm196_vm0, %v174_v4  ;;  %v179_v9 = vld [vmem:[%s166_s22 + $0x28] sm:$0xff]  ;;  %v180_v13 = vld [vmem:[%s166_s22 + $0x30] sm:$0xff] }
  0x12   : > { %396 = vmatmul.msk.f32.vlgmr.msra.gmra.mxu1 %vm196_vm0, %v178_v5  ;;  %v185_v14 = vld [vmem:[%s166_s22 + $0x58] sm:$0xff] }
  0x13   : > { %v189_v15 = vld [vmem:[%s166_s22 + $0x78] sm:$0xff] }
  0x14   : > { %v177_v16 = vld [vmem:[%s166_s22 + $0x18] sm:$0xff] }
  0x15   : > { %v181_v17 = vld [vmem:[%s166_s22 + $0x38] sm:$0xff] }
  0x18   : > { %401 = vmatmul.msk.f32.gmra.mxu2 %vm196_vm0, %v183_v6  ;;  %405 = vmatmul.msk.f32.gmra.mxu3 %vm196_vm0, %v187_v7 }
  0x19   : > { %393 = vmatmul.msk.f32.gmra.mxu0 %vm196_vm0, %v175_v8 }
  0x1a   : > { %397 = vmatmul.msk.f32.gmra.mxu1 %vm196_vm0, %v179_v9 }
  0x20   : > { %402 = vmatmul.msk.f32.gmra.mxu2 %vm196_vm0, %v184_v10  ;;  %406 = vmatmul.msk.f32.gmra.mxu3 %vm196_vm0, %v188_v11 }
  0x21   : > { %394 = vmatmul.msk.f32.gmra.mxu0 %vm196_vm0, %v176_v12 }
  0x22   : > { %398 = vmatmul.msk.f32.gmra.mxu1 %vm196_vm0, %v180_v13 }
  0x28   : > { %403 = vmatmul.msk.f32.gmra.mxu2 %vm196_vm0, %v185_v14  ;;  %407 = vmatmul.msk.f32.gmra.mxu3 %vm196_vm0, %v189_v15 }
  0x29   : > { %395 = vmatmul.msk.f32.gmra.mxu0 %vm196_vm0, %v177_v16 }
  0x2a   : > { %399 = vmatmul.msk.f32.gmra.mxu1 %vm196_vm0, %v181_v17 }
  0x8e   : > { %v262_v19 = vpop.f32.mrf.mxu0 }
  0x8f   : > { %v274_v20 = vpop.f32.mrf.mxu1  ;;  %v263_v21 = vadd.f32 %v424_v18, %v262_v19 }
  0x90   : > { %v275_v22 = vadd.f32 %v424_v18, %v274_v20 }
  0x91   : > { %311 = vst.msk [vmem:[%s499_s27] sm:$0xff] %vm310_vm1, %v263_v21 }
  0x92   : > { %315 = vst.msk [vmem:[%s499_s27 + $0x20] sm:$0xff] %vm310_vm1, %v275_v22 }
  0x93   : > { %v286_v23 = vpop.f32.mrf.mxu2  ;;  %v298_v24 = vpop.f32.mrf.mxu3 }
  0x94   : > { %v287_v25 = vadd.f32 %v424_v18, %v286_v23  ;;  %v299_v26 = vadd.f32 %v424_v18, %v298_v24 }
  0x96   : > { %319 = vst.msk [vmem:[%s499_s27 + $0x40] sm:$0xff] %vm310_vm1, %v287_v25  ;;  %v265_v27 = vpop.f32.mrf.mxu0 }
  0x97   : > { %v277_v28 = vpop.f32.mrf.mxu1  ;;  %323 = vst.msk [vmem:[%s499_s27 + $0x60] sm:$0xff] %vm310_vm1, %v299_v26  ;;  %v266_v29 = vadd.f32 %v424_v18, %v265_v27 }
  0x98   : > { %v278_v30 = vadd.f32 %v424_v18, %v277_v28 }
  0x99   : > { %312 = vst.msk [vmem:[%s499_s27 + $0x8] sm:$0xff] %vm310_vm1, %v266_v29 }
  0x9a   : > { %316 = vst.msk [vmem:[%s499_s27 + $0x28] sm:$0xff] %vm310_vm1, %v278_v30 }
  0x9b   : > { %v289_v31 = vpop.f32.mrf.mxu2  ;;  %v301_v32 = vpop.f32.mrf.mxu3 }
  0x9c   : > { %v290_v33 = vadd.f32 %v424_v18, %v289_v31  ;;  %v302_v34 = vadd.f32 %v424_v18, %v301_v32 }
  0x9e   : > { %320 = vst.msk [vmem:[%s499_s27 + $0x48] sm:$0xff] %vm310_vm1, %v290_v33  ;;  %v268_v35 = vpop.f32.mrf.mxu0 }
  0x9f   : > { %v280_v36 = vpop.f32.mrf.mxu1  ;;  %324 = vst.msk [vmem:[%s499_s27 + $0x68] sm:$0xff] %vm310_vm1, %v302_v34  ;;  %v269_v37 = vadd.f32 %v424_v18, %v268_v35 }
  0xa0   : > { %v281_v38 = vadd.f32 %v424_v18, %v280_v36 }
  0xa1   : > { %313 = vst.msk [vmem:[%s499_s27 + $0x10] sm:$0xff] %vm310_vm1, %v269_v37 }
  0xa2   : > { %317 = vst.msk [vmem:[%s499_s27 + $0x30] sm:$0xff] %vm310_vm1, %v281_v38 }
  0xa3   : > { %v292_v39 = vpop.f32.mrf.mxu2  ;;  %v304_v40 = vpop.f32.mrf.mxu3 }
  0xa4   : > { %v293_v41 = vadd.f32 %v424_v18, %v292_v39  ;;  %v305_v42 = vadd.f32 %v424_v18, %v304_v40 }
  0xa6   : > { %321 = vst.msk [vmem:[%s499_s27 + $0x50] sm:$0xff] %vm310_vm1, %v293_v41  ;;  %v271_v43 = vpop.f32.mrf.mxu0 }
  0xa7   : > { %v283_v44 = vpop.f32.mrf.mxu1  ;;  %325 = vst.msk [vmem:[%s499_s27 + $0x70] sm:$0xff] %vm310_vm1, %v305_v42  ;;  %v272_v45 = vadd.f32 %v424_v18, %v271_v43 }
  0xa8   : > { %v284_v46 = vadd.f32 %v424_v18, %v283_v44 }
  0xa9   : > { %314 = vst.msk [vmem:[%s499_s27 + $0x18] sm:$0xff] %vm310_vm1, %v272_v45 }
  0xaa   : > { %318 = vst.msk [vmem:[%s499_s27 + $0x38] sm:$0xff] %vm310_vm1, %v284_v46 }
  0xab   : > { %v295_v47 = vpop.f32.mrf.mxu2  ;;  %v307_v48 = vpop.f32.mrf.mxu3 }
  0xac   : > { %v296_v49 = vadd.f32 %v424_v18, %v295_v47  ;;  %v308_v50 = vadd.f32 %v424_v18, %v307_v48 }
  0xae   : > { %322 = vst.msk [vmem:[%s499_s27 + $0x58] sm:$0xff] %vm310_vm1, %v296_v49 }
  0xaf   : > { %326 = vst.msk [vmem:[%s499_s27 + $0x78] sm:$0xff] %vm310_vm1, %v308_v50 }
  0xb0 PF: > { %s13_s12 = sadd.s32 1, %s431_s12  }
  0xb1   : > { %p10_p4 = scmp.ge.s32.totalorder %s13_s12, 4  }
  0xb3   :  { %12 = sbr.rel (!%p10_p4) target bundleno = 1 (0x1), region = 62 }

</bundles_post_ra>
